<compile_context>
chip_gen: v6e
topology: v6e:2x2x1
jax: 0.10.0
libtpu: 0.0.40
codegen_flags: <defaults>
</compile_context>

<pallas_src>
import functools

import jax
import jax.numpy as jnp
from jax.experimental import pallas as pl
from jax.experimental.pallas import tpu as pltpu


# ------------------------------------------------------------------ kernels --

def _encode_kernel(x_ref, ew_ref, eb_ref, z_ref):
    """Z = x_flat @ E_w^T + E_b for all timesteps at once (high-M MXU pass)."""
    z_ref[...] = (
        jnp.dot(x_ref[...], ew_ref[...], preferred_element_type=jnp.float32)
        + eb_ref[...]
    ).astype(z_ref.dtype)


def _recurrent_kernel(z_ref, aw_ref, dw_ref, db_ref, out_ref, h_ref, *,
                      eps, alpha, n):
    """One grid step == one RNN time step. h stays resident in VMEM scratch."""
    t = pl.program_id(0)

    @pl.when(t == 0)
    def _init():
        h_ref[...] = jnp.zeros_like(h_ref)

    h = h_ref[...]
    # Single fused MXU pass: h @ [A | W] -> (batch, 2n).
    haw = jnp.dot(h, aw_ref[...], preferred_element_type=jnp.float32)
    hA = haw[:, :n]
    hW = haw[:, n:]
    z_t = z_ref[0]                                   # (batch, n) for this step
    h_new = h + (eps * alpha) * hA + eps * jnp.tanh(hW + z_t)
    h_ref[...] = h_new

    @pl.when(t == pl.num_programs(0) - 1)
    def _readout():
        logits = (
            jnp.dot(h_new, dw_ref[...], preferred_element_type=jnp.float32)
            + db_ref[...]
        )
        out_ref[...] = logits.astype(out_ref.dtype)


# ------------------------------------------------------------------ wrapper --

def lipschitz_rnn_forward(x, E_w, E_b, D_w, D_b, B_mat, C_mat, *,
                          beta, gamma, eps, alpha):
    """Full RnnModels forward (model='LipschitzRNN')."""
    bsz, T, d_in = x.shape
    n = B_mat.shape[0]
    n_out = D_w.shape[0]
    dtype = x.dtype

    # --- one-time parameter construction (hoisted out of the time loop) ------
    I = jnp.eye(n, dtype=B_mat.dtype)
    A = beta * (B_mat - B_mat.T) + (1.0 - beta) * (B_mat + B_mat.T) - gamma * I
    W = beta * (C_mat - C_mat.T) + (1.0 - beta) * (C_mat + C_mat.T) - gamma * I
    AW = jnp.concatenate([A, W], axis=1)            # (n, 2n) fused MXU RHS
    E_wT = E_w.T                                    # (d_in, n)
    D_wT = D_w.T                                    # (n, n_out)
    E_b2 = E_b.reshape(1, n)
    D_b2 = D_b.reshape(1, n_out)

    # --- kernel 1: input projection for ALL timesteps in one matmul ----------
    x_flat = jnp.transpose(x, (1, 0, 2)).reshape(T * bsz, d_in)   # (T*B, d_in)
    z_flat = pl.pallas_call(
        _encode_kernel,
        out_shape=jax.ShapeDtypeStruct((T * bsz, n), dtype),
        grid=(1,),
        in_specs=[
            pl.BlockSpec((T * bsz, d_in), lambda i: (0, 0)),
            pl.BlockSpec((d_in, n), lambda i: (0, 0)),
            pl.BlockSpec((1, n), lambda i: (0, 0)),
        ],
        out_specs=pl.BlockSpec((T * bsz, n), lambda i: (0, 0)),
        compiler_params=pltpu.CompilerParams(
            dimension_semantics=("arbitrary",)),
    )(x_flat, E_wT, E_b2)
    Z = z_flat.reshape(T, bsz, n)                   # (T, batch, n)

    # --- kernel 2: full recurrence + readout in ONE pallas_call --------------
    kernel = functools.partial(_recurrent_kernel, eps=eps, alpha=alpha, n=n)
    out = pl.pallas_call(
        kernel,
        out_shape=jax.ShapeDtypeStruct((bsz, n_out), dtype),
        grid=(T,),
        in_specs=[
            pl.BlockSpec((1, bsz, n), lambda t: (t, 0, 0)),   # Z_t, pipelined
            pl.BlockSpec((n, 2 * n), lambda t: (0, 0)),       # AW, DMA'd once
            pl.BlockSpec((n, n_out), lambda t: (0, 0)),       # D^T, DMA'd once
            pl.BlockSpec((1, n_out), lambda t: (0, 0)),       # D bias
        ],
        out_specs=pl.BlockSpec((bsz, n_out), lambda t: (0, 0)),
        scratch_shapes=[pltpu.VMEM((bsz, n), jnp.float32)],   # resident h
        compiler_params=pltpu.CompilerParams(
            dimension_semantics=("arbitrary",)),
    )(Z, AW, D_wT, D_b2)
    return out


# ---------------------------------------------------------------- reference --

def _reference_forward(x, E_w, E_b, D_w, D_b, B_mat, C_mat, beta, gamma, eps, alpha):
    n = B_mat.shape[0]
    I = jnp.eye(n, dtype=B_mat.dtype)
    A = beta * (B_mat - B_mat.T) + (1.0 - beta) * (B_mat + B_mat.T) - gamma * I
    W = beta * (C_mat - C_mat.T) + (1.0 - beta) * (C_mat + C_mat.T) - gamma * I
    bsz, T, _ = x.shape
    h = jnp.zeros((bsz, n), x.dtype)
    for i in range(T):
        z = x[:, i, :] @ E_w.T + E_b
        h = h + eps * alpha * (h @ A) + eps * jnp.tanh(h @ W + z)
    return h @ D_w.T + D_b


if __name__ == "__main__":
    # Small, module-consistent shapes.
    n_units = 128
    input_dim = 32
    output_classes = 10
    batch = 8
    T = 8
    beta = 0.8
    gamma = 0.01
    eps = 0.01
    alpha = 1.0
    init_std = 1.0

    key = jax.random.PRNGKey(0)
    kB, kC, kE, kEb, kD, kDb, kx = jax.random.split(key, 7)

    # gaussian_init_: Normal(0, std/n_units), shape (n_units, n_units).
    B_mat = jax.random.normal(kB, (n_units, n_units), jnp.float32) * (init_std / n_units)
    C_mat = jax.random.normal(kC, (n_units, n_units), jnp.float32) * (init_std / n_units)
    # nn.Linear weights/biases for E (encoder) and D (decoder).
    E_w = jax.random.normal(kE, (n_units, input_dim), jnp.float32) * 0.2
    E_b = jax.random.normal(kEb, (n_units,), jnp.float32) * 0.1
    D_w = jax.random.normal(kD, (output_classes, n_units), jnp.float32) * 0.2
    D_b = jax.random.normal(kDb, (output_classes,), jnp.float32) * 0.1
    x = jax.random.normal(kx, (batch, T, input_dim), jnp.float32)

    out = lipschitz_rnn_forward(
        x, E_w, E_b, D_w, D_b, B_mat, C_mat,
        beta=beta, gamma=gamma, eps=eps, alpha=alpha)
    out = jax.block_until_ready(out)

    ref = _reference_forward(
        x, E_w, E_b, D_w, D_b, B_mat, C_mat, beta, gamma, eps, alpha)

    assert out.shape == (batch, output_classes)
    max_err = float(jnp.max(jnp.abs(out - ref)))
    assert jnp.allclose(out, ref, atol=1e-4, rtol=1e-4), f"mismatch vs reference (max abs err {max_err})"

    print("KERNEL_OK")
</pallas_src>

<mosaic_0001>
module attributes {stable_mosaic.version = 11 : i64} {
  func.func @_encode_kernel(%arg0: i32, %arg1: memref<64x32xf32, #tpu.memory_space<vmem>>, %arg2: memref<32x128xf32, #tpu.memory_space<vmem>>, %arg3: memref<1x128xf32, #tpu.memory_space<vmem>>, %arg4: memref<64x128xf32, #tpu.memory_space<vmem>>) attributes {dimension_semantics = [#tpu.dimension_semantics<arbitrary>], iteration_bounds = array<i64: 1>, scalar_prefetch = 0 : i64, scratch_operands = 0 : i64, tpu.core_type = #tpu.core_type<tc>, window_params = [{pipeline_mode = #tpu.pipeline_mode<synchronous>, transform_indices = @transform_0, window_bounds = array<i64: 64, 32>}, {pipeline_mode = #tpu.pipeline_mode<synchronous>, transform_indices = @transform_1, window_bounds = array<i64: 32, 128>}, {pipeline_mode = #tpu.pipeline_mode<synchronous>, transform_indices = @transform_2, window_bounds = array<i64: 1, 128>}, {pipeline_mode = #tpu.pipeline_mode<synchronous>, transform_indices = @transform_3, window_bounds = array<i64: 64, 128>}]} {
    %c0 = arith.constant 0 : index
    %c0_0 = arith.constant 0 : index
    %0 = vector.load %arg1[%c0, %c0_0] : memref<64x32xf32, #tpu.memory_space<vmem>>, vector<64x32xf32>
    %c0_1 = arith.constant 0 : index
    %c0_2 = arith.constant 0 : index
    %1 = vector.load %arg2[%c0_1, %c0_2] : memref<32x128xf32, #tpu.memory_space<vmem>>, vector<32x128xf32>
    %cst = arith.constant dense<0.000000e+00> : vector<64x128xf32>
    %2 = tpu.matmul %0, %1, %cst {dimension_numbers = #tpu.dot_dimension_numbers<[1], [0], [0], [1], [0, 0, 1, 1], [], []>} : vector<64x32xf32>, vector<32x128xf32>, vector<64x128xf32> -> vector<64x128xf32>
    %c0_3 = arith.constant 0 : index
    %c0_4 = arith.constant 0 : index
    %3 = vector.load %arg3[%c0_3, %c0_4] : memref<1x128xf32, #tpu.memory_space<vmem>>, vector<1x128xf32>
    %4 = vector.broadcast %3 : vector<1x128xf32> to vector<64x128xf32>
    %5 = arith.addf %2, %4 : vector<64x128xf32>
    %c0_5 = arith.constant 0 : index
    %c0_6 = arith.constant 0 : index
    %6 = vector.load %arg4[%c0_5, %c0_6] : memref<64x128xf32, #tpu.memory_space<vmem>>, vector<64x128xf32>
    tpu.vector_store %arg4[%c0_5, %c0_6], %5 {strides = array<i32>} : memref<64x128xf32, #tpu.memory_space<vmem>>, vector<64x128xf32>,
    return
  }
  func.func @transform_0(%arg0: i32) -> (i32, i32) {
    %c0_i32 = arith.constant 0 : i32
    %c0_i32_0 = arith.constant 0 : i32
    %c0_i32_1 = arith.constant 0 : i32
    return %c0_i32, %c0_i32_0 : i32, i32
  }
  func.func @transform_1(%arg0: i32) -> (i32, i32) {
    %c0_i32 = arith.constant 0 : i32
    %c0_i32_0 = arith.constant 0 : i32
    %c0_i32_1 = arith.constant 0 : i32
    return %c0_i32, %c0_i32_0 : i32, i32
  }
  func.func @transform_2(%arg0: i32) -> (i32, i32) {
    %c0_i32 = arith.constant 0 : i32
    %c0_i32_0 = arith.constant 0 : i32
    %c0_i32_1 = arith.constant 0 : i32
    return %c0_i32, %c0_i32_0 : i32, i32
  }
  func.func @transform_3(%arg0: i32) -> (i32, i32) {
    %c0_i32 = arith.constant 0 : i32
    %c0_i32_0 = arith.constant 0 : i32
    %c0_i32_1 = arith.constant 0 : i32
    return %c0_i32, %c0_i32_0 : i32, i32
  }
}

</mosaic_0001>

<bundles_post_ra>
// kernel: tpu_custom_call.1
= control target key start
LH: loop header
LB: loop body
LE: loop exit
PB: predicated region body
PF: predicated region fallthrough
CT: control target
= control target key end

     0   :  { %s335_s0 = inlined_call_operand.vmem [shape: f32[64,32], index: 0, kind: input, shape index: {}]   ;;  %s336_s1 = inlined_call_operand.vmem [shape: f32[32,128], index: 1, kind: input, shape index: {}]   ;;  %s337_s2 = inlined_call_operand.vmem [shape: f32[1,128], index: 2, kind: input, shape index: {}]   ;;  %s338_s3 = inlined_call_operand.hbm [shape: f32[64,128], index: 3, kind: output, shape index: {}]  }
   0x1   :  { %v26_v0 = vld [vmem:[%s336_s1 + $0x18] sm:$0xff]  ;;  %v25_v1 = vld [vmem:[%s336_s1 + $0x10] sm:$0xff]  ;;  %v24_v2 = vld [vmem:[%s336_s1 + $0x8] sm:$0xff] }
   0x2   :  { %209 = vmatprep.subr.mxu0 %v26_v0  ;;  %229 = vmatprep.subr.mxu1 %v26_v0  ;;  %v23_v3 = vld [vmem:[%s336_s1] sm:$0xff] }
   0x3   :  { %210 = vmatpush3.msra.mxu0 %v26_v0  ;;  %233 = vmatpush3.msra.mxu1 %v26_v0 }
   0x4   :  { %211 = vmatprep.subr.mxu0 %v25_v1  ;;  %230 = vmatprep.subr.mxu1 %v25_v1 }
   0x5   :  { %212 = vmatpush3.msra.mxu0 %v25_v1  ;;  %234 = vmatpush3.msra.mxu1 %v25_v1 }
   0x6   :  { %8 = vsyncpa [#allocation3], 0  ;;  %213 = vmatprep.subr.mxu0 %v24_v2  ;;  %231 = vmatprep.subr.mxu1 %v24_v2  ;;  %v15_v4 = vld [vmem:[%s335_s0] sm:$0xff]  ;;  %vm34_vm0 = vcmask 261120   ;;  %v16_v6 = vld [vmem:[%s335_s0 + $0x8] sm:$0xff]  ;;  %s262_s10 = smov [#allocation2]  }
   0x7   :  { %214 = vmatpush3.msra.mxu0 %v24_v2  ;;  %235 = vmatpush3.msra.mxu1 %v24_v2  ;;  %v19_v5 = vld [vmem:[%s335_s0 + $0x20] sm:$0xff]  ;;  %v20_v7 = vld [vmem:[%s335_s0 + $0x28] sm:$0xff]  ;;  %v17_v8 = vld [vmem:[%s335_s0 + $0x10] sm:$0xff] }
   0x8   :  { %215 = vmatprep.subr.mxu0 %v23_v3  ;;  %232 = vmatprep.subr.mxu1 %v23_v3  ;;  %v21_v9 = vld [vmem:[%s335_s0 + $0x30] sm:$0xff]  ;;  %v18_v10 = vld [vmem:[%s335_s0 + $0x18] sm:$0xff]  ;;  %v188_v12 = vld [vmem:[%s337_s2] ss:$0 sm:$0xff] }
   0x9   :  { %216 = vmatpush3.msra.mxu0 %v23_v3  ;;  %236 = vmatpush3.msra.mxu1 %v23_v3  ;;  %v22_v11 = vld [vmem:[%s335_s0 + $0x38] sm:$0xff]  ;;  %s177_s0 = sshll.u32 %s262_s10, 4  ;;  %s178_s0 = int_to_ptr.vmem [resolvable:$true] %s177_s0 }
   0xa   :  { %217 = vmatprep.mubr.msk.f32.mxu0 %vm34_vm0, %v15_v4  ;;  %223 = vmatprep.mubr.msk.f32.mxu1 %vm34_vm0, %v19_v5  ;;  %s240_s2 = scalar_lea.vmem %s178_s0, 1024  ;;  %p245_p1 = scmp.lt.s32.totalorder %s178_s0, %s178_s0 }
   0xb   :  { %218 = vmatmul.mubr.msk.f32.vlgmr.msra.gmra.mxu0 %vm34_vm0, %v16_v6  ;;  %224 = vmatmul.mubr.msk.f32.vlgmr.msra.gmra.mxu1 %vm34_vm0, %v20_v7  ;;  %p241_p0 = scmp.ne.s32.totalorder %s178_s0, %s240_s2  ;;  %p246_p2 = scmp.lt.s32.totalorder %s240_s2, %s240_s2 }
   0xc   :  { %220 = vmatprep.mubr.msk.f32.mxu0 %vm34_vm0, %v17_v8  ;;  %226 = vmatprep.mubr.msk.f32.mxu1 %vm34_vm0, %v21_v9 }
   0xd   :  { %p247_p3 = por %p246_p2, %p245_p1 }
   0xf   :  { %221 = vmatmul.mubr.msk.f32.gmra.mxu0 %vm34_vm0, %v18_v10  ;;  %227 = vmatmul.mubr.msk.f32.gmra.mxu1 %vm34_vm0, %v22_v11  ;;  %p248_p4 = pnand %p247_p3, %p241_p0 }
  0xcb   :  { %v219_v13 = vpop.f32.mrf.mxu0  ;;  %v225_v14 = vpop.f32.mrf.mxu1 }
  0xcc   :  { %v131_v15 = vadd.f32 %v219_v13, %v188_v12  ;;  %v151_v16 = vadd.f32 %v225_v14, %v188_v12 }
  0xcd   :  { %v125_v17 = vpop.f32.mrf.mxu0  ;;  %v145_v18 = vpop.f32.mrf.mxu1 }
  0xce   :  { %165 = vst [vmem:[#allocation2 + $0x8] sm:$0xff] %v131_v15  ;;  %169 = vst [vmem:[#allocation2 + $0x28] sm:$0xff] %v151_v16  ;;  %v126_v19 = vadd.f32 %v188_v12, %v125_v17  ;;  %v146_v20 = vadd.f32 %v188_v12, %v145_v18 }
  0xcf   :  { %v222_v21 = vpop.f32.mrf.mxu0  ;;  %v228_v22 = vpop.f32.mrf.mxu1 }
  0xd0   :  { %164 = vst [vmem:[#allocation2] sm:$0xff] %v126_v19  ;;  %168 = vst [vmem:[#allocation2 + $0x20] sm:$0xff] %v146_v20  ;;  %v141_v23 = vadd.f32 %v222_v21, %v188_v12  ;;  %v161_v24 = vadd.f32 %v228_v22, %v188_v12 }
  0xd1   :  { %v135_v25 = vpop.f32.mrf.mxu0  ;;  %v155_v26 = vpop.f32.mrf.mxu1 }
  0xd2   :  { %167 = vst [vmem:[#allocation2 + $0x18] sm:$0xff] %v141_v23  ;;  %171 = vst [vmem:[#allocation2 + $0x38] sm:$0xff] %v161_v24  ;;  %v136_v27 = vadd.f32 %v188_v12, %v135_v25  ;;  %v156_v28 = vadd.f32 %v188_v12, %v155_v26 }
  0xd4   :  { %166 = vst [vmem:[#allocation2 + $0x10] sm:$0xff] %v136_v27  ;;  %170 = vst [vmem:[#allocation2 + $0x30] sm:$0xff] %v156_v28 }
  0xd5   :  { %251 = shalt.err (!%p248_p4)
}
  0xd6   :  { %s263_s11 = smov 128   ;;  %s264_s12 = smov 8  }
  0xd7   :  { %183 = dma.vmem_to_hbm [thread:$0]  %s178_s0, 1024, %s338_s3, [#allocation3], %s263_s11, %s263_s11, %s264_s12  }
  0xd8   :  { %260 = dma.done.wait [#allocation3], 1024  }
  0xd9   :  { %261 = vsyncadd [#allocation3], 4294966272 }
  0xda   :  { %187 = vsyncpa [#allocation3], 1 }

</bundles_post_ra>
